<compile_context>
chip_gen: v6e
topology: v6e:2x2x1
jax: 0.10.0
libtpu: 0.0.40
codegen_flags: <defaults>
</compile_context>

<pallas_src>
import functools

import jax
import jax.numpy as jnp
from jax.experimental import pallas as pl
from jax.experimental.pallas import tpu as pltpu


def _round_up(x, m):
    return ((x + m - 1) // m) * m


def _choose_block_rows(R, H, itemsize):
    """Pick the largest row tile that (a) keeps the double-buffered in+out
    working set well under scoped VMEM on every generation (v7x: 64 MiB
    physical), (b) keeps >= ~4 grid steps when there is enough work so both
    v7x TensorCores get sharded blocks, (c) is a multiple of 8 (sublanes)."""
    compute_bytes = H * max(itemsize, 4)            # f32 intermediates dominate
    budget = 24 * 1024 * 1024                       # headroom on v5e/v6e/v7x
    rows = budget // (4 * compute_bytes)            # 2x dbl-buffer * (in + out)
    rows = min(rows, 1024)                          # diminishing returns past ~1k
    rows = min(rows, _round_up(max((R + 3) // 4, 1), 8))   # keep grid >= ~4
    rows = max(8, (rows // 8) * 8)
    return int(rows)


def _layernorm_kernel(x_ref, gb_ref, o_ref, *, epsilon):
    x = x_ref[...].astype(jnp.float32)                       # (block_rows, H)
    # center
    mean = jnp.mean(x, axis=-1, keepdims=True)
    xc = x - mean
    # scale (reproduce the reference's (var + eps)**2 exactly — no sqrt)
    var = jnp.mean(xc * xc, axis=-1, keepdims=True)
    std = (var + epsilon) ** 2
    inv_std = pl.reciprocal(std, approx=False)               # exact; see header
    gamma = gb_ref[0:1, :].astype(jnp.float32)               # (1, H)
    beta = gb_ref[1:2, :].astype(jnp.float32)                # (1, H)
    y = xc * inv_std * gamma + beta
    o_ref[...] = y.astype(o_ref.dtype)


def layer_norm(x, gamma, beta, *, epsilon=1e-12, block_rows=None):
    """x: (..., H); gamma, beta: (H,). Returns same shape/dtype as x."""
    orig_shape = x.shape
    H = orig_shape[-1]
    x2 = x.reshape(-1, H)
    R = x2.shape[0]

    if block_rows is None:
        block_rows = _choose_block_rows(R, H, x2.dtype.itemsize)
    grid = pl.cdiv(R, block_rows)

    # Fused (gamma, beta) -> one (2, H) parameter block, one DMA stream.
    gb = jnp.stack([gamma, beta], axis=0)

    # Double-buffered (in + out) tiles + params + slack for f32 intermediates.
    tile_bytes = block_rows * H * max(x2.dtype.itemsize, 4)
    vmem_limit_bytes = int(
        min(64 * 1024 * 1024, max(16 * 1024 * 1024, 6 * tile_bytes + (1 << 20)))
    )

    kernel = functools.partial(_layernorm_kernel, epsilon=epsilon)

    out = pl.pallas_call(
        kernel,
        out_shape=jax.ShapeDtypeStruct((R, H), x.dtype),
        grid_spec=pltpu.PrefetchScalarGridSpec(
            num_scalar_prefetch=0,
            grid=(grid,),
            in_specs=[
                pl.BlockSpec((block_rows, H), lambda i: (i, 0)),
                pl.BlockSpec((2, H), lambda i: (0, 0)),
            ],
            out_specs=pl.BlockSpec((block_rows, H), lambda i: (i, 0)),
        ),
        compiler_params=pltpu.CompilerParams(
            dimension_semantics=("parallel",),
            vmem_limit_bytes=vmem_limit_bytes,
        ),
    )(x2, gb)

    return out.reshape(orig_shape)


def _reference(x, gamma, beta, epsilon=1e-12):
    x = x.astype(jnp.float32)
    mean = jnp.mean(x, axis=-1, keepdims=True)
    xc = x - mean
    var = jnp.mean(xc * xc, axis=-1, keepdims=True)
    std = (var + epsilon) ** 2
    return xc / std * gamma + beta


if __name__ == "__main__":
    key = jax.random.PRNGKey(0)
    k_x, k_g, k_b = jax.random.split(key, 3)

    batch, seq, hidden = 2, 8, 32          # input_dim = 32
    x = jax.random.normal(k_x, (batch, seq, hidden), dtype=jnp.float32)

    # Module __init__: beta = zeros(input_dim), gamma = ones(input_dim).
    # Deterministic synthetic perturbation so the affine path is exercised.
    gamma = jnp.ones((hidden,), jnp.float32) + 0.1 * jax.random.normal(k_g, (hidden,))
    beta = jnp.zeros((hidden,), jnp.float32) + 0.1 * jax.random.normal(k_b, (hidden,))

    out = layer_norm(x, gamma, beta)
    out = jax.block_until_ready(out)

    ref = _reference(x, gamma, beta)
    assert out.shape == x.shape and out.dtype == x.dtype
    assert jnp.allclose(out, ref, rtol=1e-4, atol=1e-4), "mismatch vs reference"

    print("KERNEL_OK")
</pallas_src>

<mosaic_0001>
module attributes {stable_mosaic.version = 11 : i64} {
  func.func @_layernorm_kernel(%arg0: i32, %arg1: memref<8x32xf32, #tpu.memory_space<vmem>>, %arg2: memref<2x32xf32, #tpu.memory_space<vmem>>, %arg3: memref<8x32xf32, #tpu.memory_space<vmem>>) attributes {dimension_semantics = [#tpu.dimension_semantics<parallel>], iteration_bounds = array<i64: 2>, scalar_prefetch = 0 : i64, scratch_operands = 0 : i64, tpu.core_type = #tpu.core_type<tc>, window_params = [{transform_indices = @transform_0, window_bounds = array<i64: 8, 32>}, {pipeline_mode = #tpu.pipeline_mode<synchronous>, transform_indices = @transform_1, window_bounds = array<i64: 2, 32>}, {transform_indices = @transform_2, window_bounds = array<i64: 8, 32>}]} {
    %c0 = arith.constant 0 : index
    %c0_0 = arith.constant 0 : index
    %0 = vector.load %arg1[%c0, %c0_0] : memref<8x32xf32, #tpu.memory_space<vmem>>, vector<8x32xf32>
    %cst = arith.constant dense<0.000000e+00> : vector<8xf32>
    %1 = vector.multi_reduction <add>, %0, %cst [1] : vector<8x32xf32> to vector<8xf32>
    %2 = vector.shape_cast %1 : vector<8xf32> to vector<8x1xf32>
    %cst_1 = arith.constant 3.200000e+01 : f32
    %3 = vector.broadcast %cst_1 : f32 to vector<8x1xf32>
    %4 = arith.divf %2, %3 : vector<8x1xf32>
    %5 = vector.broadcast %4 : vector<8x1xf32> to vector<8x32xf32>
    %6 = arith.subf %0, %5 : vector<8x32xf32>
    %7 = arith.mulf %6, %6 : vector<8x32xf32>
    %cst_2 = arith.constant dense<0.000000e+00> : vector<8xf32>
    %8 = vector.multi_reduction <add>, %7, %cst_2 [1] : vector<8x32xf32> to vector<8xf32>
    %9 = vector.shape_cast %8 : vector<8xf32> to vector<8x1xf32>
    %cst_3 = arith.constant 3.200000e+01 : f32
    %10 = vector.broadcast %cst_3 : f32 to vector<8x1xf32>
    %11 = arith.divf %9, %10 : vector<8x1xf32>
    %cst_4 = arith.constant 9.99999996E-13 : f32
    %12 = vector.broadcast %cst_4 : f32 to vector<8x1xf32>
    %13 = arith.addf %11, %12 : vector<8x1xf32>
    %14 = arith.mulf %13, %13 : vector<8x1xf32>
    %15 = tpu.reciprocal %14 : vector<8x1xf32> -> vector<8x1xf32>
    %c0_5 = arith.constant 0 : index
    %c0_6 = arith.constant 0 : index
    %16 = vector.load %arg2[%c0_5, %c0_6] : memref<2x32xf32, #tpu.memory_space<vmem>>, vector<1x32xf32>
    %c1 = arith.constant 1 : index
    %c0_7 = arith.constant 0 : index
    %17 = vector.load %arg2[%c1, %c0_7] : memref<2x32xf32, #tpu.memory_space<vmem>>, vector<1x32xf32>
    %18 = vector.broadcast %15 : vector<8x1xf32> to vector<8x32xf32>
    %19 = arith.mulf %6, %18 : vector<8x32xf32>
    %20 = vector.broadcast %16 : vector<1x32xf32> to vector<8x32xf32>
    %21 = arith.mulf %19, %20 : vector<8x32xf32>
    %22 = vector.broadcast %17 : vector<1x32xf32> to vector<8x32xf32>
    %23 = arith.addf %21, %22 : vector<8x32xf32>
    %c0_8 = arith.constant 0 : index
    %c0_9 = arith.constant 0 : index
    %24 = vector.load %arg3[%c0_8, %c0_9] : memref<8x32xf32, #tpu.memory_space<vmem>>, vector<8x32xf32>
    tpu.vector_store %arg3[%c0_8, %c0_9], %23 {strides = array<i32>} : memref<8x32xf32, #tpu.memory_space<vmem>>, vector<8x32xf32>,
    return
  }
  func.func @transform_0(%arg0: i32) -> (i32, i32) {
    %c0_i32 = arith.constant 0 : i32
    %c0_i32_0 = arith.constant 0 : i32
    return %arg0, %c0_i32 : i32, i32
  }
  func.func @transform_1(%arg0: i32) -> (i32, i32) {
    %c0_i32 = arith.constant 0 : i32
    %c0_i32_0 = arith.constant 0 : i32
    %c0_i32_1 = arith.constant 0 : i32
    return %c0_i32, %c0_i32_0 : i32, i32
  }
  func.func @transform_2(%arg0: i32) -> (i32, i32) {
    %c0_i32 = arith.constant 0 : i32
    %c0_i32_0 = arith.constant 0 : i32
    return %arg0, %c0_i32 : i32, i32
  }
}

</mosaic_0001>

<bundles_post_ra>
// kernel: tpu_custom_call.1
= control target key start
LH: loop header
LB: loop body
LE: loop exit
PB: predicated region body
PF: predicated region fallthrough
CT: control target
= control target key end

     0   :  { %7 = vsyncpa [#allocation3], 0  ;;  %s682_s0 = inlined_call_operand.hbm [shape: f32[16,32], index: 0, kind: input, shape index: {}]   ;;  %s683_s1 = inlined_call_operand.hbm [shape: f32[2,32], index: 1, kind: input, shape index: {}]   ;;  %s684_s2 = inlined_call_operand.hbm [shape: f32[16,32], index: 2, kind: output, shape index: {}]  }
   0x1   :  { %9 = vsyncpa [#allocation3 + $0x1], 0 }
   0x2   :  { %10 = vsyncpa [#allocation6], 0 }
   0x3   :  { %11 = vsyncpa [#allocation4], 0 }
   0x4   :  { %13 = vsyncpa [#allocation4 + $0x1], 0  ;;  %s513_s9 = smov 0   ;;  %s515_s10 = smov 0  }
   0x5   :  { %s517_s11 = smov 0   ;;  %s519_s12 = smov 0  }
   0x6 LB: > { %s534_s13 = sadd.s32 4294967295, %s493_s12   ;;  %s296_s14 = sadd.s32 4294967294, %s493_s12   ;;  %s493_s12 = sphi %s519_s12, %s707_s12   ;;  %s489_s11 = sphi %s517_s11, %s706_s11   ;;  %s485_s10 = sphi %s515_s10, %s705_s10   ;;  %s481_s9 = sphi %s513_s9, %s704_s9  }
   0x7   : > { %p39_p0 = scmp.ne.s32.totalorder %s485_s10, %s481_s9  ;;  %p685_p1 = scmp.eq.s32.totalorder %s534_s13, 0 }
   0x8   : > { %p90_p3 = scmp.eq.s32.totalorder %s296_s14, 1  ;;  %p297_p5 = scmp.ge.s32.totalorder %s493_s12, 1 }
   0x9   : > { %p543_p4 = por %p685_p1, %p39_p0  ;;  %p97_p7 = scmp.lt.s32.totalorder %s493_s12, 3 }
   0xa   : > { %p548_p6 = por %p90_p3, %p39_p0  ;;  %s495_s18 = smov [#allocation5]  }
   0xb   : > { %s689_s15 = scalar_select %p543_p4, 1, 0 }
   0xc   : > { %s690_s16 = scalar_select %p548_p6, 1, 0 }
   0xd   : > { %p553_p8 = pnand %p297_p5, %p97_p7  ;;  %s110_s19 = sshll.u32 %s495_s18, 4  ;;  %s111_s19 = int_to_ptr.vmem [resolvable:$true] %s110_s19 }
   0xe   : > { %s561_s20 = sadd.s32 1, %s493_s12   ;;  %s26_s24 = sadd.s32 1, %s489_s11 }
   0xf   : > { %s691_s17 = scalar_select %p553_p8, 1, 0 }
  0x10   : > { %p320_p10 = pneg %p553_p8  ;;  %s23_s22 = ssub.s32 %s493_s12, %s561_s20 }
  0x11   : > { %p571_p12 = scmp.eq.s32.totalorder %s23_s22, 0  ;;  %p33_p13 = scmp.ne.s32.totalorder %s489_s11, %s485_s10 }
  0x12   : > { %p565_p11 = pnand %p320_p10, %p685_p1  ;;  %s382_s25 = scalar_lea.vmem %s111_s19, 32 }
  0x13   : > { %p383_p3 = scmp.ne.s32.totalorder %s111_s19, %s382_s25  ;;  %p390_p9 = scmp.lt.s32.totalorder %s111_s19, %s111_s19 }
  0x14   : > { %p373_p0 = pneg %p565_p11  ;;  %p391_p2 = scmp.lt.s32.totalorder %s382_s25, %s382_s25 }
  0x16   : > { %p385_p5 = pnand %p383_p3, %p373_p0  ;;  %p392_p10 = por %p391_p2, %p390_p9 }
  0x18   : > { %p386_p7 = pneg %p385_p5 }
  0x1a   : > { %p393_p1 = pnand %p392_p10, %p386_p7 }
  0x1c   : > { %396 = shalt.err (!%p393_p1)
}
  0x1d   : > { %323 = dma.hbm_to_vmem [thread:$0]  (!%p565_p11), %s683_s1, 32, %s111_s19, [#allocation6]  }
  0x1e   : > { %s588_s28 = scalar_select %p571_p12, %s489_s11, %s26_s24  }
  0x1f   : > { %p34_p1 = scmp.eq.s32.totalorder %s493_s12, 0  ;;  %p694_p2 = scmp.eq.s32.totalorder %s534_s13, 1 }
  0x20   : > { %p333_p0 = scmp.lt.s32.totalorder %s493_s12, 2  ;;  %s121_s30 = sand.u32 1, %s489_s11  }
  0x21   : > { %p596_p9 = por %p694_p2, %p33_p13  ;;  %p35_p3 = por %p34_p1, %p33_p13 }
  0x22   : > { %s300_s3 = sshll.u32 %s121_s30, 3  ;;  %s301_s4 = sshll.u32 %s493_s12, 7 }
  0x23   : > { %s695_s29 = scalar_select %p596_p9, 1, 0 }
  0x24   : > { %s609_s7 = scalar_lea.hbm %s682_s0, %s301_s4  ;;  %s125_s8 = scalar_lea.vmem [#allocation2], %s300_s3 }
  0x25   : > { %s132_s14 = sshll.u32 %s125_s8, 4  ;;  %p611_p11 = pnand %p333_p0, %p35_p3  ;;  %s133_s14 = int_to_ptr.vmem [resolvable:$true] %s132_s14 }
  0x26   : > { %s122_s19 = scalar_lea.sflag [#allocation3], %s121_s30  ;;  %s397_s21 = scalar_lea.hbm %s609_s7, 128 }
  0x27   : > { %p398_p12 = scmp.ne.s32.totalorder %s609_s7, %s397_s21  ;;  %p399_p13 = pneg %p611_p11 }
  0x28   : > { %s402_s24 = scalar_lea.hbm %s682_s0, 256  ;;  %p403_p10 = scmp.lt.s32.totalorder %s609_s7, %s682_s0 }
  0x29   : > { %p400_p5 = pnand %p399_p13, %p398_p12  ;;  %p404_p1 = scmp.lt.s32.totalorder %s402_s24, %s397_s21 }
  0x2b   : > { %p401_p7 = pneg %p400_p5  ;;  %p405_p2 = por %p404_p1, %p403_p10 }
  0x2d   : > { %p406_p0 = pnand %p405_p2, %p401_p7 }
  0x2f   : > { %409 = shalt.err (!%p406_p0)
}
  0x30   : > { %s410_s27 = scalar_lea.vmem %s133_s14, 128  ;;  %s496_s30 = smov [#allocation2]  }
  0x31   : > { %p411_p3 = scmp.ne.s32.totalorder %s133_s14, %s410_s27  ;;  %s415_s3 = sshll.u32 %s496_s30, 4  ;;  %s416_s3 = int_to_ptr.vmem [resolvable:$false] %s415_s3 }
  0x32   : > { %s417_s4 = scalar_lea.vmem %s416_s3, 256  ;;  %p418_p12 = scmp.lt.s32.totalorder %s133_s14, %s416_s3 }
  0x33   : > { %p413_p6 = pnand %p411_p3, %p399_p13  ;;  %p419_p5 = scmp.lt.s32.totalorder %s417_s4, %s410_s27 }
  0x35   : > { %p414_p9 = pneg %p413_p6  ;;  %p420_p4 = por %p419_p5, %p418_p12 }
  0x37   : > { %p421_p8 = pnand %p420_p4, %p414_p9 }
  0x39   : > { %424 = shalt.err (!%p421_p8)
}
  0x3a   : > { %327 = dma.hbm_to_vmem [thread:$0]  (!%p611_p11), %s609_s7, 128, %s133_s14, %s122_s19  }
  0x3b   : > { %p697_p7 = scmp.ne.s32.totalorder %s691_s17, 0 }
  0x3c   : > { %s632_s5 = sand.u32 (!%p697_p7), 1, %s485_s10   ;;  %p698_p6 = scmp.ne.s32.totalorder (!%p697_p7), %s689_s15, 0 }
  0x3d   : > { %141 = sbr.rel (%p697_p7) target bundleno = 394 (0x18a), region = 28  ;;  %s303_s6 = sshll.u32 (!%p697_p7), %s632_s5, 3 }
  0x3e   : > { %s144_s8 = scalar_lea.sflag (!%p697_p7), [#allocation3], %s632_s5  ;;  %s147_s21 = scalar_lea.vmem (!%p697_p7), [#allocation2], %s303_s6 }
  0x42   : > { %468 = dma.done.wait (%p698_p6), %s144_s8, 128  }
  0x43   : > { %470 = vsyncadd (%p698_p6), %s144_s8, 4294967168  ;;  %p699_p4 = scmp.eq.s32.totalorder %s534_s13, 0 }
  0x45   : > { %472 = dma.done.wait (%p699_p4), [#allocation6], 32   ;;  %p700_p8 = pmov %p699_p4 }
  0x46   : > { %vm173_vm0 = vcmask 261120   ;;  %v172_v0 = vld [vmem:[%s147_s21] sm:$0xff]  ;;  %v306_v12 = vld [vmem:[#allocation5] ss:$0 sm:$0xff]  ;;  %v307_v14 = vld [vmem:[#allocation5 + $0x1] ss:$0 sm:$0xff] }
  0x47   : > { %474 = vsyncadd (%p700_p8), [#allocation6], 4294967264  ;;  %v174_v1 = vsel %vm173_vm0, %v172_v0, 0.0  ;;  %s309_s15 = sshll.u32 %s534_s13, 7  ;;  %s171_s17 = scalar_lea.vmem [#allocation7], %s303_s6 }
  0x48   : > { %175 = vadd.xlane.f32.xlu0 %v174_v1  ;;  %s216_s7 = sshll.u32 %s171_s17, 4  ;;  %s214_s19 = scalar_lea.hbm %s684_s2, %s309_s15  ;;  %s217_s7 = int_to_ptr.vmem [resolvable:$true] %s216_s7 }
  0x49   : > { %s203_s22 = scalar_lea.sflag [#allocation4], %s632_s5  ;;  %s425_s23 = scalar_lea.vmem %s217_s7, 128 }
  0x4a   : > { %p426_p9 = scmp.ne.s32.totalorder %s217_s7, %s425_s23  ;;  %p701_p11 = scmp.ne.s32.totalorder %s695_s29, 0 }
  0x4b   : > { %s497_s24 = smov [#allocation7]  }
  0x4c   : > { %p427_p13 = pnand %p426_p9, %p701_p11  ;;  %s429_s25 = sshll.u32 %s497_s24, 4  ;;  %s430_s25 = int_to_ptr.vmem [resolvable:$false] %s429_s25 }
  0x4d   : > { %s431_s13 = scalar_lea.vmem %s430_s25, 256  ;;  %p432_p1 = scmp.lt.s32.totalorder %s217_s7, %s430_s25 }
  0x4e   : > { %p428_p10 = pneg %p427_p13  ;;  %p433_p2 = scmp.lt.s32.totalorder %s431_s13, %s425_s23 }
  0x50   : > { %p434_p0 = por %p433_p2, %p432_p1 }
  0x52   : > { %p435_p3 = pnand %p434_p0, %p428_p10 }
  0xd1   : > { %v176_v2 = vpop.xlane.xlu0 %175 }
  0xd2   : > { %v178_v3 = vmul.f32 0.03125, %v176_v2 }
  0xd4   : > { %v179_v4 = vsub.f32 %v172_v0, %v178_v3 }
  0xd6   : > { %v180_v5 = vmul.f32 %v179_v4, %v179_v4 }
  0xd8   : > { %v181_v6 = vsel %vm173_vm0, %v180_v5, 0.0 }
  0xd9   : > { %182 = vadd.xlane.f32.xlu0 %v181_v6 }
 0x162   : > { %v183_v7 = vpop.xlane.xlu0 %182 }
 0x163   : > { %v184_v8 = vmul.f32 0.03125, %v183_v7 }
 0x165   : > { %v185_v9 = vadd.f32 1e-12, %v184_v8 }
 0x167   : > { %v186_v10 = vmul.f32 %v185_v9, %v185_v9 }
 0x169   : > { %369 = vrcp.f32 %v186_v10 }
 0x176   : > { %v370_v11 = vpop.eup %369 }
 0x177   : > { %v190_v13 = vmul.f32 %v370_v11, %v179_v4 }
 0x179   : > { %v195_v15 = vmul.f32 %v306_v12, %v190_v13 }
 0x17b   : > { %v200_v16 = vadd.f32 %v307_v14, %v195_v15 }
 0x17d   : > { %201 = vst.msk [vmem:[%s171_s17] sm:$0xff] %vm173_vm0, %v200_v16 }
 0x17e   : > { %438 = shalt.err (!%p435_p3)
}
 0x17f   : > { %s439_s26 = scalar_lea.hbm %s214_s19, 128  ;;  %s443_s3 = scalar_lea.hbm %s684_s2, 256 }
 0x180   : > { %p440_p12 = scmp.ne.s32.totalorder %s214_s19, %s439_s26  ;;  %p444_p6 = scmp.lt.s32.totalorder %s214_s19, %s684_s2 }
 0x181   : > { %p445_p4 = scmp.lt.s32.totalorder %s443_s3, %s439_s26 }
 0x182   : > { %p441_p5 = pnand %p440_p12, %p701_p11 }
 0x183   : > { %p446_p8 = por %p445_p4, %p444_p6 }
 0x184   : > { %p442_p7 = pneg %p441_p5 }
 0x186   : > { %p447_p9 = pnand %p446_p8, %p442_p7 }
 0x188   : > { %450 = shalt.err (!%p447_p9)
}
 0x189   : > { %318 = dma.vmem_to_hbm [thread:$0]  (%p701_p11), %s217_s7, 128, %s214_s19, %s203_s22  }
 0x18a PF: > { %s228_s6 = sand.u32 1, %s481_s9   ;;  %p702_p13 = scmp.ne.s32.totalorder %s690_s16, 0 }
 0x18b   : > { %p703_p10 = scmp.ge.s32.totalorder %s493_s12, 2  ;;  %s229_s8 = scalar_lea.sflag [#allocation4], %s228_s6 }
 0x18d   : > { %p329_p1 = pnand %p703_p10, %p702_p13 }
 0x18f   : > { %p330_p2 = pneg %p329_p1 }
 0x191   : > { %476 = dma.done.wait (%p330_p2), %s229_s8, 128  }
 0x192   : > { %478 = vsyncadd (%p330_p2), %s229_s8, 4294967168  ;;  %p16_p0 = scmp.ge.s32.totalorder %s561_s20, 4   ;;  %s704_s9 = smov %s485_s10 }
 0x193   : > { %s705_s10 = smov %s489_s11  ;;  %s706_s11 = smov %s588_s28 }
 0x194   : > { %s707_s12 = smov %s561_s20  ;;  %18 = sbr.rel (!%p16_p0) target bundleno = 6 (0x6), region = 77 }
 0x199   :  { %234 = vsyncpa [#allocation3], 1 }
 0x19a   :  { %236 = vsyncpa [#allocation3 + $0x1], 1 }
 0x19b   :  { %237 = vsyncpa [#allocation6], 1 }
 0x19c   :  { %238 = vsyncpa [#allocation4], 1 }
 0x19d   :  { %240 = vsyncpa [#allocation4 + $0x1], 1 }

</bundles_post_ra>
